<compile_context>
chip_gen: v7x
topology: tpu7x:2x2x1
jax: 0.10.0
libtpu: 0.0.40
codegen_flags: <defaults>
</compile_context>

<pallas_src>
import jax
import jax.numpy as jnp
from jax import lax
from jax.experimental import pallas as pl
from jax.experimental.pallas import tpu as pltpu
import numpy as np


def _make_bottleneck_kernel(H, W):
    HW = H * W

    def kernel(x_ref, w1_ref, w2_ref, w3_ref, mask_ref,
               s1_ref, b1_ref, s2_ref, b2_ref, s3_ref, b3_ref, o_ref):
        # x_ref block: (1, Cin, HW) bf16, spatial on lanes (lane-dense).
        x16 = x_ref[0]                                           # (Cin, HW)

        # ---- conv1 (1x1) + bn1 + relu ----
        y1 = jnp.dot(w1_ref[...], x16,
                     preferred_element_type=jnp.float32)         # (width, HW)
        y1 = jnp.maximum(y1 * s1_ref[...] + b1_ref[...], 0.0)

        # ---- conv2 (3x3, stride=1, pad=1) as ONE im2col matmul ----
        # 9 taps via lane rolls + zero-padding validity masks; no VMEM
        # scratch, no misaligned sublane slices.
        taps = []
        t = 0
        for oh in (-1, 0, 1):
            for ow in (-1, 0, 1):
                off = oh * W + ow
                if off == 0:
                    tap = y1                                     # center tap
                else:
                    rolled = pltpu.roll(y1, (-off) % HW, axis=1)
                    tap = rolled * mask_ref[t:t + 1, :]
                taps.append(tap)
                t += 1
        patches = jnp.concatenate(taps, axis=0).astype(jnp.bfloat16)  # (9*w, HW)
        y2 = jnp.dot(w2_ref[...], patches,
                     preferred_element_type=jnp.float32)         # (width, HW)
        y2 = jnp.maximum(y2 * s2_ref[...] + b2_ref[...], 0.0)

        # ---- conv3 (1x1) + bn3 + residual add + relu ----
        y3 = jnp.dot(w3_ref[...], y2.astype(jnp.bfloat16),
                     preferred_element_type=jnp.float32)         # (Cout, HW)
        y3 = y3 * s3_ref[...] + b3_ref[...]
        out = jnp.maximum(y3 + x16.astype(jnp.float32), 0.0)     # identity = x
        o_ref[0] = out.astype(o_ref.dtype)

    return kernel


def bottleneck_forward(x_nchw, w1, w2, w3, s1, b1, s2, b2, s3, b3):
    """x_nchw: (N, Cin, H, W) f32 (PyTorch layout).
    w1: (Cin, width), w2: (3,3,width,width) HWIO, w3: (width, Cout).
    s*/b*: folded eval-mode BN scale/bias, shape (C,)."""
    N, Cin, H, W = x_nchw.shape
    width = w1.shape[1]
    Cout = w3.shape[1]
    HW = H * W

    # Lane-dense activation layout: (N, C, H*W) with the spatial axis on lanes.
    x_flat = x_nchw.reshape(N, Cin, HW).astype(jnp.bfloat16)

    # Weights pre-transposed so every conv is (Cout, K) @ (K, HW); conv2 weight
    # is reshaped for im2col: row order (di, dj, cin) -> tap*width + cin.
    w1t = jnp.transpose(w1).astype(jnp.bfloat16)                      # (width, Cin)
    w2r = jnp.transpose(w2, (3, 0, 1, 2)).reshape(width, 9 * width)
    w2r = w2r.astype(jnp.bfloat16)                                    # (width, 9*width)
    w3t = jnp.transpose(w3).astype(jnp.bfloat16)                      # (Cout, width)

    # Per-channel BN affine, broadcast along lanes (epilogue stays f32).
    s1c, b1c = s1.reshape(width, 1), b1.reshape(width, 1)
    s2c, b2c = s2.reshape(width, 1), b2.reshape(width, 1)
    s3c, b3c = s3.reshape(Cout, 1), b3.reshape(Cout, 1)

    # Validity masks for the 9 conv2 taps (zero-padding semantics), built once.
    hh = np.arange(H)[:, None]
    ww = np.arange(W)[None, :]
    masks = []
    for oh in (-1, 0, 1):
        for ow in (-1, 0, 1):
            valid = ((hh + oh >= 0) & (hh + oh < H) &
                     (ww + ow >= 0) & (ww + ow < W))
            masks.append(valid.reshape(HW))
    mask_arr = jnp.asarray(np.stack(masks).astype(np.float32))        # (9, HW)

    kernel = _make_bottleneck_kernel(H, W)
    rep = lambda n: (0, 0)  # replicated (untiled) operands

    grid_spec = pltpu.PrefetchScalarGridSpec(
        num_scalar_prefetch=0,
        grid=(N,),
        in_specs=[
            pl.BlockSpec((1, Cin, HW), lambda n: (n, 0, 0)),   # x
            pl.BlockSpec((width, Cin), rep),                   # w1t
            pl.BlockSpec((width, 9 * width), rep),             # w2r (im2col)
            pl.BlockSpec((Cout, width), rep),                  # w3t
            pl.BlockSpec((9, HW), rep),                        # tap masks
            pl.BlockSpec((width, 1), rep),                     # s1
            pl.BlockSpec((width, 1), rep),                     # b1
            pl.BlockSpec((width, 1), rep),                     # s2
            pl.BlockSpec((width, 1), rep),                     # b2
            pl.BlockSpec((Cout, 1), rep),                      # s3
            pl.BlockSpec((Cout, 1), rep),                      # b3
        ],
        out_specs=pl.BlockSpec((1, Cout, HW), lambda n: (n, 0, 0)),
    )

    out_flat = pl.pallas_call(
        kernel,
        out_shape=jax.ShapeDtypeStruct((N, Cout, HW), jnp.float32),
        grid_spec=grid_spec,
        compiler_params=pltpu.CompilerParams(
            dimension_semantics=("parallel",)),
    )(x_flat, w1t, w2r, w3t, mask_arr, s1c, b1c, s2c, b2c, s3c, b3c)

    return out_flat.reshape(N, Cout, H, W)


def fold_bn(gamma, beta, mean, var, eps=1e-5):
    scale = gamma / jnp.sqrt(var + eps)
    bias = beta - mean * scale
    return scale, bias


def reference_bottleneck(x_nchw, w1, w2, w3, s1, b1, s2, b2, s3, b3,
                         compute_dtype=jnp.float32):
    """Pure-JAX NCHW reference mirroring the PyTorch eval-mode forward.
    compute_dtype=bfloat16 mirrors the kernel's MXU-operand precision."""
    dn = ('NCHW', 'HWIO', 'NCHW')

    def conv(a, w, pad):
        return lax.conv_general_dilated(
            a.astype(compute_dtype), w.astype(compute_dtype), (1, 1), pad,
            dimension_numbers=dn, preferred_element_type=jnp.float32)

    def affine(c):
        return c.reshape(1, -1, 1, 1)

    xin = x_nchw.astype(compute_dtype)
    y = conv(xin, w1[None, None], 'VALID')
    y = jnp.maximum(y * affine(s1) + affine(b1), 0.0)
    y = conv(y, w2, ((1, 1), (1, 1)))
    y = jnp.maximum(y * affine(s2) + affine(b2), 0.0)
    y = conv(y, w3[None, None], 'VALID')
    y = y * affine(s3) + affine(b3)
    return jnp.maximum(y + xin.astype(jnp.float32), 0.0)


if __name__ == "__main__":
    # Module config: inplanes=16, planes=4, stride=1, downsample=None
    # -> width = 4, out channels = planes * expansion = 16 (matches identity)
    N, H, W = 2, 16, 16
    inplanes, planes = 16, 4
    width = planes          # base_width=64, groups=1
    cout = planes * 4

    key = jax.random.PRNGKey(0)
    keys = jax.random.split(key, 16)

    # input in PyTorch NCHW layout
    x = jax.random.normal(keys[0], (N, inplanes, H, W), jnp.float32)

    # conv weights ((in,out) for 1x1 convs, HWIO for the 3x3 conv)
    w1 = 0.1 * jax.random.normal(keys[1], (inplanes, width), jnp.float32)
    w2 = 0.1 * jax.random.normal(keys[2], (3, 3, width, width), jnp.float32)
    w3 = 0.1 * jax.random.normal(keys[3], (width, cout), jnp.float32)

    def bn_params(kg, kb, km, kv, c):
        gamma = 0.5 + jax.random.uniform(kg, (c,), jnp.float32)
        beta = 0.1 * jax.random.normal(kb, (c,), jnp.float32)
        mean = 0.1 * jax.random.normal(km, (c,), jnp.float32)
        var = 0.5 + jax.random.uniform(kv, (c,), jnp.float32)
        return gamma, beta, mean, var

    s1, b1 = fold_bn(*bn_params(keys[4], keys[5], keys[6], keys[7], width))
    s2, b2 = fold_bn(*bn_params(keys[8], keys[9], keys[10], keys[11], width))
    s3, b3 = fold_bn(*bn_params(keys[12], keys[13], keys[14], keys[15], cout))

    out = jax.block_until_ready(
        bottleneck_forward(x, w1, w2, w3, s1, b1, s2, b2, s3, b3))

    # Tight check vs a reference using the same bf16 matmul operands
    # (validates the conv / im2col / BN / residual structure exactly).
    ref16 = jax.block_until_ready(reference_bottleneck(
        x, w1, w2, w3, s1, b1, s2, b2, s3, b3, compute_dtype=jnp.bfloat16))
    np.testing.assert_allclose(np.asarray(out), np.asarray(ref16),
                               rtol=1e-4, atol=1e-4)

    # Loose sanity check vs the full-f32 PyTorch-equivalent forward
    # (tolerance accounts for deliberate bf16 MXU-operand precision).
    ref32 = jax.block_until_ready(reference_bottleneck(
        x, w1, w2, w3, s1, b1, s2, b2, s3, b3, compute_dtype=jnp.float32))
    np.testing.assert_allclose(np.asarray(out), np.asarray(ref32),
                               rtol=1e-1, atol=1e-1)

    print("KERNEL_OK")
</pallas_src>

<mosaic_0001>
module attributes {stable_mosaic.version = 11 : i64} {
  func.func @kernel(%arg0: i32, %arg1: memref<1x16x256xbf16, #tpu.memory_space<vmem>>, %arg2: memref<4x16xbf16, #tpu.memory_space<vmem>>, %arg3: memref<4x36xbf16, #tpu.memory_space<vmem>>, %arg4: memref<16x4xbf16, #tpu.memory_space<vmem>>, %arg5: memref<9x256xf32, #tpu.memory_space<vmem>>, %arg6: memref<4x1xf32, #tpu.memory_space<vmem>>, %arg7: memref<4x1xf32, #tpu.memory_space<vmem>>, %arg8: memref<4x1xf32, #tpu.memory_space<vmem>>, %arg9: memref<4x1xf32, #tpu.memory_space<vmem>>, %arg10: memref<16x1xf32, #tpu.memory_space<vmem>>, %arg11: memref<16x1xf32, #tpu.memory_space<vmem>>, %arg12: memref<1x16x256xf32, #tpu.memory_space<vmem>>) attributes {dimension_semantics = [#tpu.dimension_semantics<parallel>], iteration_bounds = array<i64: 2>, scalar_prefetch = 0 : i64, scratch_operands = 0 : i64, tpu.core_type = #tpu.core_type<tc>, window_params = [{transform_indices = @transform_0, window_bounds = array<i64: 1, 16, 256>}, {pipeline_mode = #tpu.pipeline_mode<synchronous>, transform_indices = @transform_1, window_bounds = array<i64: 4, 16>}, {pipeline_mode = #tpu.pipeline_mode<synchronous>, transform_indices = @transform_2, window_bounds = array<i64: 4, 36>}, {pipeline_mode = #tpu.pipeline_mode<synchronous>, transform_indices = @transform_3, window_bounds = array<i64: 16, 4>}, {pipeline_mode = #tpu.pipeline_mode<synchronous>, transform_indices = @transform_4, window_bounds = array<i64: 9, 256>}, {pipeline_mode = #tpu.pipeline_mode<synchronous>, transform_indices = @transform_5, window_bounds = array<i64: 4, 1>}, {pipeline_mode = #tpu.pipeline_mode<synchronous>, transform_indices = @transform_6, window_bounds = array<i64: 4, 1>}, {pipeline_mode = #tpu.pipeline_mode<synchronous>, transform_indices = @transform_7, window_bounds = array<i64: 4, 1>}, {pipeline_mode = #tpu.pipeline_mode<synchronous>, transform_indices = @transform_8, window_bounds = array<i64: 4, 1>}, {pipeline_mode = #tpu.pipeline_mode<synchronous>, transform_indices = @transform_9, window_bounds = array<i64: 16, 1>}, {pipeline_mode = #tpu.pipeline_mode<synchronous>, transform_indices = @transform_10, window_bounds = array<i64: 16, 1>}, {transform_indices = @transform_11, window_bounds = array<i64: 1, 16, 256>}]} {
    %c0 = arith.constant 0 : index
    %c0_0 = arith.constant 0 : index
    %c0_1 = arith.constant 0 : index
    %0 = vector.load %arg1[%c0, %c0_0, %c0_1] : memref<1x16x256xbf16, #tpu.memory_space<vmem>>, vector<1x16x256xbf16>
    %1 = vector.shape_cast %0 : vector<1x16x256xbf16> to vector<16x256xbf16>
    %c0_2 = arith.constant 0 : index
    %c0_3 = arith.constant 0 : index
    %2 = vector.load %arg2[%c0_2, %c0_3] : memref<4x16xbf16, #tpu.memory_space<vmem>>, vector<4x16xbf16>
    %cst = arith.constant dense<0.000000e+00> : vector<4x256xf32>
    %3 = tpu.matmul %2, %1, %cst {dimension_numbers = #tpu.dot_dimension_numbers<[1], [0], [0], [1], [0, 0, 1, 1], [], []>} : vector<4x16xbf16>, vector<16x256xbf16>, vector<4x256xf32> -> vector<4x256xf32>
    %c0_4 = arith.constant 0 : index
    %c0_5 = arith.constant 0 : index
    %4 = vector.load %arg6[%c0_4, %c0_5] : memref<4x1xf32, #tpu.memory_space<vmem>>, vector<4x1xf32>
    %5 = vector.broadcast %4 : vector<4x1xf32> to vector<4x256xf32>
    %6 = arith.mulf %3, %5 : vector<4x256xf32>
    %c0_6 = arith.constant 0 : index
    %c0_7 = arith.constant 0 : index
    %7 = vector.load %arg7[%c0_6, %c0_7] : memref<4x1xf32, #tpu.memory_space<vmem>>, vector<4x1xf32>
    %8 = vector.broadcast %7 : vector<4x1xf32> to vector<4x256xf32>
    %9 = arith.addf %6, %8 : vector<4x256xf32>
    %cst_8 = arith.constant 0.000000e+00 : f32
    %10 = vector.broadcast %cst_8 : f32 to vector<4x256xf32>
    %11 = arith.maximumf %9, %10 : vector<4x256xf32>
    %c17_i32 = arith.constant 17 : i32
    %12 = tpu.dynamic_rotate %11 by %c17_i32 dim 1 : vector<4x256xf32>, i32 -> vector<4x256xf32>
    %c0_9 = arith.constant 0 : index
    %c0_10 = arith.constant 0 : index
    %13 = vector.load %arg5[%c0_9, %c0_10] : memref<9x256xf32, #tpu.memory_space<vmem>>, vector<1x256xf32>
    %14 = vector.broadcast %13 : vector<1x256xf32> to vector<4x256xf32>
    %15 = arith.mulf %12, %14 : vector<4x256xf32>
    %c16_i32 = arith.constant 16 : i32
    %16 = tpu.dynamic_rotate %11 by %c16_i32 dim 1 : vector<4x256xf32>, i32 -> vector<4x256xf32>
    %c1 = arith.constant 1 : index
    %c0_11 = arith.constant 0 : index
    %17 = vector.load %arg5[%c1, %c0_11] : memref<9x256xf32, #tpu.memory_space<vmem>>, vector<1x256xf32>
    %18 = vector.broadcast %17 : vector<1x256xf32> to vector<4x256xf32>
    %19 = arith.mulf %16, %18 : vector<4x256xf32>
    %c15_i32 = arith.constant 15 : i32
    %20 = tpu.dynamic_rotate %11 by %c15_i32 dim 1 : vector<4x256xf32>, i32 -> vector<4x256xf32>
    %c2 = arith.constant 2 : index
    %c0_12 = arith.constant 0 : index
    %21 = vector.load %arg5[%c2, %c0_12] : memref<9x256xf32, #tpu.memory_space<vmem>>, vector<1x256xf32>
    %22 = vector.broadcast %21 : vector<1x256xf32> to vector<4x256xf32>
    %23 = arith.mulf %20, %22 : vector<4x256xf32>
    %c1_i32 = arith.constant 1 : i32
    %24 = tpu.dynamic_rotate %11 by %c1_i32 dim 1 : vector<4x256xf32>, i32 -> vector<4x256xf32>
    %c3 = arith.constant 3 : index
    %c0_13 = arith.constant 0 : index
    %25 = vector.load %arg5[%c3, %c0_13] : memref<9x256xf32, #tpu.memory_space<vmem>>, vector<1x256xf32>
    %26 = vector.broadcast %25 : vector<1x256xf32> to vector<4x256xf32>
    %27 = arith.mulf %24, %26 : vector<4x256xf32>
    %c255_i32 = arith.constant 255 : i32
    %28 = tpu.dynamic_rotate %11 by %c255_i32 dim 1 : vector<4x256xf32>, i32 -> vector<4x256xf32>
    %c5 = arith.constant 5 : index
    %c0_14 = arith.constant 0 : index
    %29 = vector.load %arg5[%c5, %c0_14] : memref<9x256xf32, #tpu.memory_space<vmem>>, vector<1x256xf32>
    %30 = vector.broadcast %29 : vector<1x256xf32> to vector<4x256xf32>
    %31 = arith.mulf %28, %30 : vector<4x256xf32>
    %c241_i32 = arith.constant 241 : i32
    %32 = tpu.dynamic_rotate %11 by %c241_i32 dim 1 : vector<4x256xf32>, i32 -> vector<4x256xf32>
    %c6 = arith.constant 6 : index
    %c0_15 = arith.constant 0 : index
    %33 = vector.load %arg5[%c6, %c0_15] : memref<9x256xf32, #tpu.memory_space<vmem>>, vector<1x256xf32>
    %34 = vector.broadcast %33 : vector<1x256xf32> to vector<4x256xf32>
    %35 = arith.mulf %32, %34 : vector<4x256xf32>
    %c240_i32 = arith.constant 240 : i32
    %36 = tpu.dynamic_rotate %11 by %c240_i32 dim 1 : vector<4x256xf32>, i32 -> vector<4x256xf32>
    %c7 = arith.constant 7 : index
    %c0_16 = arith.constant 0 : index
    %37 = vector.load %arg5[%c7, %c0_16] : memref<9x256xf32, #tpu.memory_space<vmem>>, vector<1x256xf32>
    %38 = vector.broadcast %37 : vector<1x256xf32> to vector<4x256xf32>
    %39 = arith.mulf %36, %38 : vector<4x256xf32>
    %c239_i32 = arith.constant 239 : i32
    %40 = tpu.dynamic_rotate %11 by %c239_i32 dim 1 : vector<4x256xf32>, i32 -> vector<4x256xf32>
    %c8 = arith.constant 8 : index
    %c0_17 = arith.constant 0 : index
    %41 = vector.load %arg5[%c8, %c0_17] : memref<9x256xf32, #tpu.memory_space<vmem>>, vector<1x256xf32>
    %42 = vector.broadcast %41 : vector<1x256xf32> to vector<4x256xf32>
    %43 = arith.mulf %40, %42 : vector<4x256xf32>
    %44 = tpu.concatenate %15, %19, %23, %27, %11, %31, %35, %39, %43 in 0 : vector<4x256xf32>, vector<4x256xf32>, vector<4x256xf32>, vector<4x256xf32>, vector<4x256xf32>, vector<4x256xf32>, vector<4x256xf32>, vector<4x256xf32>, vector<4x256xf32> -> vector<36x256xf32>
    %45 = arith.truncf %44 : vector<36x256xf32> to vector<36x256xbf16>
    %c0_18 = arith.constant 0 : index
    %c0_19 = arith.constant 0 : index
    %46 = vector.load %arg3[%c0_18, %c0_19] : memref<4x36xbf16, #tpu.memory_space<vmem>>, vector<4x36xbf16>
    %cst_20 = arith.constant dense<0.000000e+00> : vector<4x256xf32>
    %47 = tpu.matmul %46, %45, %cst_20 {dimension_numbers = #tpu.dot_dimension_numbers<[1], [0], [0], [1], [0, 0, 1, 1], [], []>} : vector<4x36xbf16>, vector<36x256xbf16>, vector<4x256xf32> -> vector<4x256xf32>
    %c0_21 = arith.constant 0 : index
    %c0_22 = arith.constant 0 : index
    %48 = vector.load %arg8[%c0_21, %c0_22] : memref<4x1xf32, #tpu.memory_space<vmem>>, vector<4x1xf32>
    %49 = vector.broadcast %48 : vector<4x1xf32> to vector<4x256xf32>
    %50 = arith.mulf %47, %49 : vector<4x256xf32>
    %c0_23 = arith.constant 0 : index
    %c0_24 = arith.constant 0 : index
    %51 = vector.load %arg9[%c0_23, %c0_24] : memref<4x1xf32, #tpu.memory_space<vmem>>, vector<4x1xf32>
    %52 = vector.broadcast %51 : vector<4x1xf32> to vector<4x256xf32>
    %53 = arith.addf %50, %52 : vector<4x256xf32>
    %cst_25 = arith.constant 0.000000e+00 : f32
    %54 = vector.broadcast %cst_25 : f32 to vector<4x256xf32>
    %55 = arith.maximumf %53, %54 : vector<4x256xf32>
    %c0_26 = arith.constant 0 : index
    %c0_27 = arith.constant 0 : index
    %56 = vector.load %arg4[%c0_26, %c0_27] : memref<16x4xbf16, #tpu.memory_space<vmem>>, vector<16x4xbf16>
    %57 = arith.truncf %55 : vector<4x256xf32> to vector<4x256xbf16>
    %cst_28 = arith.constant dense<0.000000e+00> : vector<16x256xf32>
    %58 = tpu.matmul %56, %57, %cst_28 {dimension_numbers = #tpu.dot_dimension_numbers<[1], [0], [0], [1], [0, 0, 1, 1], [], []>} : vector<16x4xbf16>, vector<4x256xbf16>, vector<16x256xf32> -> vector<16x256xf32>
    %c0_29 = arith.constant 0 : index
    %c0_30 = arith.constant 0 : index
    %59 = vector.load %arg10[%c0_29, %c0_30] : memref<16x1xf32, #tpu.memory_space<vmem>>, vector<16x1xf32>
    %60 = vector.broadcast %59 : vector<16x1xf32> to vector<16x256xf32>
    %61 = arith.mulf %58, %60 : vector<16x256xf32>
    %c0_31 = arith.constant 0 : index
    %c0_32 = arith.constant 0 : index
    %62 = vector.load %arg11[%c0_31, %c0_32] : memref<16x1xf32, #tpu.memory_space<vmem>>, vector<16x1xf32>
    %63 = vector.broadcast %62 : vector<16x1xf32> to vector<16x256xf32>
    %64 = arith.addf %61, %63 : vector<16x256xf32>
    %65 = arith.extf %1 : vector<16x256xbf16> to vector<16x256xf32>
    %66 = arith.addf %64, %65 : vector<16x256xf32>
    %cst_33 = arith.constant 0.000000e+00 : f32
    %67 = vector.broadcast %cst_33 : f32 to vector<16x256xf32>
    %68 = arith.maximumf %66, %67 : vector<16x256xf32>
    %c0_34 = arith.constant 0 : index
    %c0_35 = arith.constant 0 : index
    %c0_36 = arith.constant 0 : index
    %69 = vector.load %arg12[%c0_34, %c0_35, %c0_36] : memref<1x16x256xf32, #tpu.memory_space<vmem>>, vector<1x16x256xf32>
    %70 = vector.shape_cast %69 : vector<1x16x256xf32> to vector<16x256xf32>
    %71 = vector.shape_cast %68 : vector<16x256xf32> to vector<1x16x256xf32>
    tpu.vector_store %arg12[%c0_34, %c0_35, %c0_36], %71 {strides = array<i32>} : memref<1x16x256xf32, #tpu.memory_space<vmem>>, vector<1x16x256xf32>,
    return
  }
  func.func @transform_0(%arg0: i32) -> (i32, i32, i32) {
    %c0_i32 = arith.constant 0 : i32
    %c0_i32_0 = arith.constant 0 : i32
    %c0_i32_1 = arith.constant 0 : i32
    return %arg0, %c0_i32, %c0_i32_0 : i32, i32, i32
  }
  func.func @transform_1(%arg0: i32) -> (i32, i32) {
    %c0_i32 = arith.constant 0 : i32
    %c0_i32_0 = arith.constant 0 : i32
    %c0_i32_1 = arith.constant 0 : i32
    return %c0_i32, %c0_i32_0 : i32, i32
  }
  func.func @transform_2(%arg0: i32) -> (i32, i32) {
    %c0_i32 = arith.constant 0 : i32
    %c0_i32_0 = arith.constant 0 : i32
    %c0_i32_1 = arith.constant 0 : i32
    return %c0_i32, %c0_i32_0 : i32, i32
  }
  func.func @transform_3(%arg0: i32) -> (i32, i32) {
    %c0_i32 = arith.constant 0 : i32
    %c0_i32_0 = arith.constant 0 : i32
    %c0_i32_1 = arith.constant 0 : i32
    return %c0_i32, %c0_i32_0 : i32, i32
  }
  func.func @transform_4(%arg0: i32) -> (i32, i32) {
    %c0_i32 = arith.constant 0 : i32
    %c0_i32_0 = arith.constant 0 : i32
    %c0_i32_1 = arith.constant 0 : i32
    return %c0_i32, %c0_i32_0 : i32, i32
  }
  func.func @transform_5(%arg0: i32) -> (i32, i32) {
    %c0_i32 = arith.constant 0 : i32
    %c0_i32_0 = arith.constant 0 : i32
    %c0_i32_1 = arith.constant 0 : i32
    return %c0_i32, %c0_i32_0 : i32, i32
  }
  func.func @transform_6(%arg0: i32) -> (i32, i32) {
    %c0_i32 = arith.constant 0 : i32
    %c0_i32_0 = arith.constant 0 : i32
    %c0_i32_1 = arith.constant 0 : i32
    return %c0_i32, %c0_i32_0 : i32, i32
  }
  func.func @transform_7(%arg0: i32) -> (i32, i32) {
    %c0_i32 = arith.constant 0 : i32
    %c0_i32_0 = arith.constant 0 : i32
    %c0_i32_1 = arith.constant 0 : i32
    return %c0_i32, %c0_i32_0 : i32, i32
  }
  func.func @transform_8(%arg0: i32) -> (i32, i32) {
    %c0_i32 = arith.constant 0 : i32
    %c0_i32_0 = arith.constant 0 : i32
    %c0_i32_1 = arith.constant 0 : i32
    return %c0_i32, %c0_i32_0 : i32, i32
  }
  func.func @transform_9(%arg0: i32) -> (i32, i32) {
    %c0_i32 = arith.constant 0 : i32
    %c0_i32_0 = arith.constant 0 : i32
    %c0_i32_1 = arith.constant 0 : i32
    return %c0_i32, %c0_i32_0 : i32, i32
  }
  func.func @transform_10(%arg0: i32) -> (i32, i32) {
    %c0_i32 = arith.constant 0 : i32
    %c0_i32_0 = arith.constant 0 : i32
    %c0_i32_1 = arith.constant 0 : i32
    return %c0_i32, %c0_i32_0 : i32, i32
  }
  func.func @transform_11(%arg0: i32) -> (i32, i32, i32) {
    %c0_i32 = arith.constant 0 : i32
    %c0_i32_0 = arith.constant 0 : i32
    %c0_i32_1 = arith.constant 0 : i32
    return %arg0, %c0_i32, %c0_i32_0 : i32, i32, i32
  }
}

</mosaic_0001>

<bundles_post_ra>
// kernel: tpu_custom_call.1
= control target key start
LH: loop header
LB: loop body
LE: loop exit
PB: predicated region body
PF: predicated region fallthrough
CT: control target
= control target key end

     0   :  { %16 = vsyncpa [#allocation3], 0  ;;  %s1408_s0 = inlined_call_operand.vmem [shape: bf16[2,16,256], index: 0, kind: input, shape index: {}]   ;;  %s1409_s1 = inlined_call_operand.vmem [shape: bf16[4,16], index: 1, kind: input, shape index: {}]   ;;  %s1410_s2 = inlined_call_operand.vmem [shape: bf16[4,36], index: 2, kind: input, shape index: {}]   ;;  %s1411_s3 = inlined_call_operand.vmem [shape: bf16[16,4], index: 3, kind: input, shape index: {}]   ;;  %s1412_s4 = inlined_call_operand.vmem [shape: f32[9,256], index: 4, kind: input, shape index: {}]   ;;  %s1413_s5 = inlined_call_operand.vmem [shape: f32[4,1], index: 5, kind: input, shape index: {}]   ;;  %s1414_s6 = inlined_call_operand.vmem [shape: f32[4,1], index: 6, kind: input, shape index: {}]   ;;  %s1415_s7 = inlined_call_operand.vmem [shape: f32[4,1], index: 7, kind: input, shape index: {}]   ;;  %s1416_s8 = inlined_call_operand.vmem [shape: f32[4,1], index: 8, kind: input, shape index: {}]   ;;  %s1417_s9 = inlined_call_operand.vmem [shape: f32[16,1], index: 9, kind: input, shape index: {}]   ;;  %s1418_s10 = inlined_call_operand.vmem [shape: f32[16,1], index: 10, kind: input, shape index: {}]   ;;  %s1419_s11 = inlined_call_operand.hbm [shape: f32[2,16,256], index: 11, kind: output, shape index: {}]  }
   0x1   :  { %18 = vsyncpa [#allocation3 + $0x1], 0  ;;  %s1153_s17 = smov 0   ;;  %s1155_s18 = smov 0  }
   0x2   :  { %s1157_s19 = smov 0   ;;  %s1159_s20 = smov 0  }
   0x3 LB: > { %s1174_s21 = sadd.s32 4294967295, %s1080_s20   ;;  %s935_s22 = sadd.s32 4294967294, %s1080_s20   ;;  %s1080_s20 = sphi %s1159_s20, %s1427_s20   ;;  %s1076_s19 = sphi %s1157_s19, %s1426_s19   ;;  %s1072_s18 = sphi %s1155_s18, %s1425_s18   ;;  %s1068_s17 = sphi %s1153_s17, %s1424_s17  }
   0x4   : > { %s1178_s23 = sadd.s32 1, %s1080_s20   ;;  %s267_s24 = sadd.s32 1, %s1076_s19 }
   0x5   : > { %s264_s25 = ssub.s32 %s1080_s20, %s1178_s23  ;;  %p277_p0 = scmp.ne.s32.totalorder %s1076_s19, %s1072_s18 }
   0x6   : > { %p265_p1 = scmp.eq.s32.totalorder %s264_s25, 0  ;;  %p278_p2 = scmp.eq.s32.totalorder %s1174_s21, 1 }
   0x7   : > { %p283_p3 = scmp.ne.s32.totalorder %s1072_s18, %s1068_s17  ;;  %p284_p4 = scmp.eq.s32.totalorder %s935_s22, 1 }
   0x8   : > { %s1189_s26 = scalar_select %p265_p1, %s1076_s19, %s267_s24  }
   0x9   : > { %p1191_p5 = por %p278_p2, %p277_p0  ;;  %p1195_p6 = por %p284_p4, %p283_p3 }
   0xa   : > { %p938_p7 = scmp.ge.s32.totalorder %s1080_s20, 1  ;;  %p340_p8 = scmp.lt.s32.totalorder %s1080_s20, 3 }
   0xc   : > { %p341_p9 = pnand %p938_p7, %p340_p8 }
   0xd   : > { %p380_p10 = scmp.lt.s32.totalorder (!%p341_p9), %s1174_s21, 1  ;;  %v1082_v0 = vmov (!%p341_p9), 0   ;;  %v444_v1 = vld [vmem:[%s1413_s5] sm:$0xf] (!%p341_p9)  ;;  %vm399_vm0 = vcmask (!%p341_p9), 130048   ;;  %s1083_s30 = smov (!%p341_p9), 1   ;;  %v466_v26 = vlaneseq (!%p341_p9) }
   0xe   : > { %344 = sbr.rel (%p341_p9) target bundleno = 870 (0x366), region = 64  ;;  %435 = vmatprep.mubr.bf16.mxu0 (!%p341_p9), %v1082_v0  ;;  %1013 = vset.pattern.permute.xlu0 (!%p341_p9), %v1082_v0  ;;  %v452_v2 = vld [vmem:[%s1414_s6] sm:$0xf] (!%p341_p9)  ;;  %s1085_s13 = smov (!%p341_p9), 17   ;;  %v812_v24 = vld [vmem:[%s1417_s9 + $0x8] sm:$0xff] (!%p341_p9)  ;;  %vm663_vm6 = vcmask (!%p341_p9), 1043456  }
   0xf   : > { %447 = vperm.xlu0 (!%p341_p9), %1013, %v444_v1   ;;  %722 = vmatprep.mubr.bf16.mxu1 (!%p341_p9), %v1082_v0  ;;  %v388_v7 = vld [vmem:[%s1409_s1] sm:$0x3] (!%p341_p9)  ;;  %s1086_s14 = smov (!%p341_p9), 15   ;;  %s1088_s16 = smov (!%p341_p9), 112   ;;  %v828_v25 = vld [vmem:[%s1418_s10 + $0x8] sm:$0xff] (!%p341_p9)  ;;  %v474_v29 = vshrl.u32 (!%p341_p9), %v466_v26, 7 }
  0x10   : > { %1014 = vset.pattern.permute.xlu1 (!%p341_p9), %v1082_v0  ;;  %s1089_s22 = smov (!%p341_p9), 113   ;;  %v731_v20 = vld [vmem:[%s1415_s7] sm:$0xf] (!%p341_p9)  ;;  %v1263_v30 = vand.u32 (!%p341_p9), 127, %v466_v26  ;;  %vm683_vm10 = vcmask (!%p341_p9), 1041408   ;;  %vm679_vm11 = vcmask (!%p341_p9), 293888  }
  0x11   : > { %v811_v21 = vld [vmem:[%s1417_s9] sm:$0xff] (!%p341_p9)  ;;  %v1265_v33 = vsub.s32 (!%p341_p9), 0, %v474_v29  ;;  %v1267_v34 = vsub.s32 (!%p341_p9), 1, %v474_v29  ;;  %vm758_vm12 = vcmask (!%p341_p9), 31744  }
  0x12   : > { %v827_v22 = vld [vmem:[%s1418_s10] sm:$0xff] (!%p341_p9)  ;;  %vm489_vm1 = vcmp.lt.s32.totalorder (!%p341_p9), %v1263_v30, 16  ;;  %vm533_vm2 = vcmp.lt.s32.totalorder (!%p341_p9), %v1263_v30, 1  ;;  %vm468_vm3 = vcmp.lt.s32.totalorder (!%p341_p9), %v1263_v30, 17  ;;  %vm511_vm4 = vcmp.lt.s32.totalorder (!%p341_p9), %v1263_v30, 15 }
  0x13   : > { %455 = vperm.xlu0 (!%p341_p9), %1013, %v452_v2   ;;  %v739_v23 = vld [vmem:[%s1416_s8] sm:$0xf] (!%p341_p9)  ;;  %vm555_vm5 = vcmp.lt.s32.totalorder (!%p341_p9), %v1263_v30, 127  ;;  %vm599_vm7 = vcmp.lt.s32.totalorder (!%p341_p9), %v1263_v30, 112  ;;  %vm577_vm8 = vcmp.lt.s32.totalorder (!%p341_p9), %v1263_v30, 113  ;;  %vm621_vm9 = vcmp.lt.s32.totalorder (!%p341_p9), %v1263_v30, 111 }
  0x14   : > { %v945_v35 = vld [vmem:[%s1412_s4 + $0x1] ss:$8 sm:$0x3] (!%p341_p9)  ;;  %v947_v36 = vld [vmem:[%s1412_s4 + $0x3] ss:$8 sm:$0x3] (!%p341_p9) }
  0x15   : > { %s381_s12 = scalar_select %p380_p10, %s1174_s21, 1  ;;  %v498_v39 = vrot.slane %v945_v35, %v1265_v33  ;;  %v502_v40 = vrot.slane %v945_v35, %v1267_v34  ;;  %v542_v41 = vrot.slane %v947_v36, %v1265_v33  ;;  %v471_v42 = vld [vmem:[%s1412_s4] ss:$8 sm:$0x3]  ;;  %v546_v45 = vrot.slane %v947_v36, %v1267_v34 }
  0x16   : > { %v946_v48 = vld [vmem:[%s1412_s4 + $0x2] ss:$8 sm:$0x3]  ;;  %v476_v49 = vrot.slane %v471_v42, %v1265_v33  ;;  %v480_v50 = vrot.slane %v471_v42, %v1267_v34  ;;  %v951_v42 = vld [vmem:[%s1412_s4 + $0x10] ss:$8 sm:$0x3] }
  0x17   : > { %s962_s15 = sshll.u32 %s381_s12, 4  ;;  %s1420_s12 = smov 16   ;;  %v520_v59 = vrot.slane %v946_v48, %v1265_v33  ;;  %v524_v60 = vrot.slane %v946_v48, %v1267_v34  ;;  %v630_v48 = vrot.slane %v951_v42, %v1265_v33 }
  0x18   : > { %s384_s24 = scalar_lea.vmem %s1408_s0, %s962_s15  ;;  %s1087_s15 = smov 127  }
  0x19   : > { %v1212_v3 = vld [vmem:[%s384_s24] sm:$0xff]  ;;  %v1214_v4 = vld [vmem:[%s384_s24 + $0x8] sm:$0xff]  ;;  %s1090_s24 = smov 111  }
  0x1a   : > { %v943_v5 = vcombine.high %v1212_v3, %v1214_v4  ;;  %v942_v6 = vcombine.low %v1212_v3, %v1214_v4 }
  0x1c   : > { %403 = vmatprep.subr.bf16.mxu0 %v943_v5 }
  0x1d   : > { %404 = vmatpush1.bf16.msra.mxu0 %v942_v6 }
  0x20   : > { %944 = vmatmul.mubr.msk.bf16.vlgmr.msra.gmra.mrb[0].mxu0 %vm399_vm0, %v388_v7 }
  0x21   : > { %800 = vmatprep.mubr.bf16.mxu0 %v1082_v0  ;;  %v948_v0 = vld [vmem:[%s1412_s4 + $0x5] ss:$8 sm:$0x3] }
  0x8e   : > { %v448_v8 = vpop.permute.xlu0 %447 }
  0x92   : > { %v456_v12 = vpop.permute.xlu0 %455 }
  0xf3   : > { %v437_v9 = vpop.f32.mrb[0].mxu0 }
  0xf4   : > { %v450_v10 = vmul.f32 %v448_v8, %v437_v9  ;;  %v439_v11 = vpop.f32.mrb[1].mxu0 }
  0xf5   : > { %v451_v13 = vmul.f32 %v448_v8, %v439_v11  ;;  %v441_v14 = vpop.f32.mrb[2].mxu0  ;;  %v564_v11 = vrot.slane %v948_v0, %v1265_v33 }
  0xf6   : > { %v458_v15 = vadd.f32 %v456_v12, %v450_v10  ;;  %v442_v16 = vpop.f32.mrb[3].mxu0 }
  0xf7   : > { %v459_v18 = vadd.f32 %v456_v12, %v451_v13  ;;  %v568_v12 = vrot.slane %v948_v0, %v1267_v34  ;;  %v950_v13 = vld [vmem:[%s1412_s4 + $0x7] ss:$8 sm:$0x3] }
  0xf8   : > { %v1223_v17 = vmax.f32 %v458_v15, 0.0  ;;  %v608_v26 = vrot.slane %v950_v13, %v1265_v33 }
  0xf9   : > { %v1228_v19 = vmax.f32 %v459_v18, 0.0 }
  0xfa   : > { %529 = vrot.lane.b32.xlu0 %v1223_v17, %s1083_s30  ;;  %485 = vrot.lane.b32.xlu1 %v1223_v17, %s1420_s12 }
  0xfe   : > { %462 = vrot.lane.b32.xlu0 %v1223_v17, %s1085_s13  ;;  %487 = vrot.lane.b32.xlu1 %v1228_v19, %s1420_s12  ;;  %s377_s12 = sand.u32 1, %s1072_s18  }
 0x102   : > { %507 = vrot.lane.b32.xlu0 %v1223_v17, %s1086_s14  ;;  %531 = vrot.lane.b32.xlu1 %v1228_v19, %s1083_s30  ;;  %s1091_s30 = smov [#allocation2]  }
 0x106   : > { %551 = vrot.lane.b32.xlu0 %v1223_v17, %s1087_s15  ;;  %464 = vrot.lane.b32.xlu1 %v1228_v19, %s1085_s13  ;;  %s963_s13 = sshll.u32 %s1174_s21, 9  ;;  %s1366_s21 = scalar_lea.sflag [#allocation3], %s377_s12 }
 0x107   : > { %s1360_s29 = scalar_lea.hbm %s1419_s11, %s963_s13 }
 0x10a   : > { %595 = vrot.lane.b32.xlu0 %v1223_v17, %s1088_s16  ;;  %509 = vrot.lane.b32.xlu1 %v1228_v19, %s1086_s14 }
 0x10e   : > { %573 = vrot.lane.b32.xlu0 %v1223_v17, %s1089_s22  ;;  %553 = vrot.lane.b32.xlu1 %v1228_v19, %s1087_s15 }
 0x112   : > { %617 = vrot.lane.b32.xlu0 %v1223_v17, %s1090_s24  ;;  %597 = vrot.lane.b32.xlu1 %v1228_v19, %s1088_s16 }
 0x116   : > { %734 = vperm.xlu0 %1013, %v731_v20   ;;  %575 = vrot.lane.b32.xlu1 %v1228_v19, %s1089_s22 }
 0x11a   : > { %815 = vperm.xlu0 %1013, %v811_v21   ;;  %619 = vrot.lane.b32.xlu1 %v1228_v19, %s1090_s24  ;;  %s939_s24 = sshll.u32 %s377_s12, 5 }
 0x11b   : > { %s379_s14 = scalar_lea.vmem [#allocation2], %s939_s24  ;;  %s1022_s24 = sshll.u32 %s1091_s30, 4  ;;  %s1023_s24 = int_to_ptr.vmem [resolvable:$false] %s1022_s24 }
 0x11c   : > { %s873_s15 = sshll.u32 %s379_s14, 4  ;;  %s1024_s13 = scalar_lea.vmem %s1023_s24, 1024  ;;  %s1362_s15 = int_to_ptr.vmem [resolvable:$true] %s873_s15 }
 0x11d   : > { %s1018_s22 = scalar_lea.vmem %s1362_s15, 512  ;;  %p1025_p0 = scmp.lt.s32.totalorder %s1362_s15, %s1023_s24 }
 0x11e   : > { %831 = vperm.xlu0 %1013, %v827_v22   ;;  %742 = vperm.xlu1 %1014, %v739_v23   ;;  %p1019_p11 = scmp.ne.s32.totalorder %s1362_s15, %s1018_s22  ;;  %p1026_p1 = scmp.lt.s32.totalorder %s1024_s13, %s1018_s22 }
 0x120   : > { %p1020_p12 = pnand %p1019_p11, %p1191_p5  ;;  %p1027_p2 = por %p1026_p1, %p1025_p0 }
 0x122   : > { %820 = vperm.xlu1 %1014, %v812_v24   ;;  %p1021_p13 = pneg %p1020_p12 }
 0x124   : > { %p1028_p3 = pnand %p1027_p2, %p1021_p13 }
 0x126   : > { %836 = vperm.xlu1 %1014, %v828_v25  }
 0x16c   : > { %v530_v27 = vpop.permute.xlu0 %529  ;;  %v486_v28 = vpop.permute.xlu1 %485 }
 0x170   : > { %v463_v31 = vpop.permute.xlu0 %462  ;;  %v488_v32 = vpop.permute.xlu1 %487 }
 0x171   : > { %v490_v43 = vsel %vm489_vm1, %v486_v28, %v488_v32  ;;  %v491_v44 = vsel %vm489_vm1, %v488_v32, %v486_v28  ;;  %v949_v28 = vld [vmem:[%s1412_s4 + $0x6] ss:$8 sm:$0x3] }
 0x172   : > { %v505_v52 = vmul.f32 %v498_v39, %v491_v44  ;;  %v506_v53 = vmul.f32 %v502_v40, %v490_v43  ;;  %v586_v40 = vrot.slane %v949_v28, %v1265_v33 }
 0x174   : > { %v508_v37 = vpop.permute.xlu0 %507  ;;  %v532_v38 = vpop.permute.xlu1 %531  ;;  %v641_v1 = vrot.slane %v505_v52, 4  ;;  %v642_v2 = vrot.slane %v506_v53, 4 }
 0x175   : > { %v534_v46 = vsel %vm533_vm2, %v530_v27, %v532_v38  ;;  %v535_v47 = vsel %vm533_vm2, %v532_v38, %v530_v27  ;;  %v612_v27 = vrot.slane %v950_v13, %v1267_v34 }
 0x176   : > { %v549_v56 = vmul.f32 %v542_v41, %v535_v47  ;;  %v550_v57 = vmul.f32 %v546_v45, %v534_v46  ;;  %v590_v41 = vrot.slane %v949_v28, %v1267_v34 }
 0x178   : > { %v465_v51 = vpop.permute.xlu1 %464  ;;  %v552_v58 = vpop.permute.xlu0 %551  ;;  %v647_v7 = vrot.slane %v549_v56, 4  ;;  %v648_v8 = vrot.slane %v550_v57, 4 }
 0x179   : > { %v469_v54 = vsel %vm468_vm3, %v463_v31, %v465_v51  ;;  %v470_v55 = vsel %vm468_vm3, %v465_v51, %v463_v31 }
 0x17a   : > { %v483_v61 = vmul.f32 %v476_v49, %v470_v55  ;;  %v484_v62 = vmul.f32 %v480_v50, %v469_v54  ;;  %v634_v49 = vrot.slane %v951_v42, %v1267_v34 }
 0x17c   : > { %v510_v63 = vpop.permute.xlu1 %509  ;;  %v596_v14 = vpop.permute.xlu0 %595  ;;  %v665_v16 = vsel %vm663_vm6, %v484_v62, %v642_v2  ;;  %v664_v20 = vsel %vm663_vm6, %v483_v61, %v641_v1  ;;  %v678_v1 = vld [vmem:[%s1410_s2] sm:$0x3] }
 0x17d   : > { %v512_v5 = vsel %vm511_vm4, %v508_v37, %v510_v63  ;;  %v513_v6 = vsel %vm511_vm4, %v510_v63, %v508_v37 }
 0x17e   : > { %v527_v9 = vmul.f32 %v520_v59, %v513_v6  ;;  %v528_v10 = vmul.f32 %v524_v60, %v512_v5 }
 0x180   : > { %v554_v15 = vpop.permute.xlu1 %553  ;;  %v667_v18 = vsel %vm663_vm6, %v528_v10, %v648_v8  ;;  %v666_v21 = vsel %vm663_vm6, %v527_v9, %v647_v7  ;;  %v574_v37 = vpop.permute.xlu0 %573 }
 0x181   : > { %v556_v22 = vsel %vm555_vm5, %v552_v58, %v554_v15  ;;  %v557_v23 = vsel %vm555_vm5, %v554_v15, %v552_v58  ;;  %v673_v24 = vpack.c.bf16 %v667_v18, %v665_v16  ;;  %v672_v25 = vpack.c.bf16 %v666_v21, %v664_v20  ;;  %v1017_v20 = vld [vmem:[%s1411_s3] sm:$0xff]  }
 0x182   : > { %v571_v29 = vmul.f32 %v564_v11, %v556_v22  ;;  %v572_v31 = vmul.f32 %v568_v12, %v557_v23 }
 0x183   : > { %690 = vmatprep.subr.bf16.mxu1 %v673_v24 }
 0x184   : > { %691 = vmatpush1.bf16.msra.mxu1 %v672_v25  ;;  %v598_v32 = vpop.permute.xlu1 %597  ;;  %v653_v43 = vrot.slane %v571_v29, 4  ;;  %v654_v44 = vrot.slane %v572_v31, 4  ;;  %v618_v54 = vpop.permute.xlu0 %617  ;;  %v843_v25 = vunpack.c.l.bf16 %v1212_v3  ;;  %v844_v29 = vunpack.c.h.bf16 %v1212_v3 }
 0x185   : > { %v600_v35 = vsel %vm599_vm7, %v596_v14, %v598_v32  ;;  %v601_v36 = vsel %vm599_vm7, %v598_v32, %v596_v14 }
 0x186   : > { %v615_v38 = vmul.f32 %v608_v26, %v600_v35  ;;  %v616_v39 = vmul.f32 %v612_v27, %v601_v36  ;;  %v669_v56 = vsel %vm663_vm6, %v1228_v19, %v654_v44  ;;  %v668_v58 = vsel %vm663_vm6, %v1223_v17, %v653_v43 }
 0x187   : > { %v845_v36 = vunpack.c.l.bf16 %v1214_v4 }
 0x188   : > { %v576_v45 = vpop.permute.xlu1 %575  ;;  %v659_v50 = vrot.slane %v615_v38, 4  ;;  %v660_v51 = vrot.slane %v616_v39, 4 }
 0x189   : > { %v578_v46 = vsel %vm577_vm8, %v574_v37, %v576_v45  ;;  %v579_v47 = vsel %vm577_vm8, %v576_v45, %v574_v37 }
 0x18a   : > { %v593_v52 = vmul.f32 %v586_v40, %v578_v46  ;;  %v594_v53 = vmul.f32 %v590_v41, %v579_v47  ;;  %v846_v41 = vunpack.c.h.bf16 %v1214_v4 }
 0x18c   : > { %v620_v55 = vpop.permute.xlu1 %619  ;;  %v671_v57 = vsel %vm663_vm6, %v594_v53, %v660_v51  ;;  %v670_v59 = vsel %vm663_vm6, %v593_v52, %v659_v50 }
 0x18d   : > { %v622_v33 = vsel %vm621_vm9, %v618_v54, %v620_v55  ;;  %v623_v34 = vsel %vm621_vm9, %v620_v55, %v618_v54  ;;  %v675_v60 = vpack.c.bf16 %v671_v57, %v669_v56  ;;  %v674_v61 = vpack.c.bf16 %v670_v59, %v668_v58 }
 0x18e   : > { %v637_v62 = vmul.f32 %v630_v48, %v622_v33  ;;  %v638_v63 = vmul.f32 %v634_v49, %v623_v34 }
 0x18f   : > { %692 = vmatprep.subr.bf16.mxu1 %v675_v60 }
 0x190   : > { %v676_v19 = vpack.c.bf16 %v637_v62, %v637_v62  ;;  %v677_v0 = vpack.c.bf16 %v638_v63, %v638_v63  ;;  %693 = vmatpush1.bf16.msra.mxu1 %v674_v61 }
 0x192   : > { %952 = vmatprep.subr.msk.bf16.mxu1 %vm683_vm10, %v677_v0  ;;  %v685_v17 = vsel %vm683_vm10, %v676_v19, 0 }
 0x194   : > { %695 = vmatpush1.bf16.msra.mxu1 %v685_v17 }
 0x195   : > { %v735_v30 = vpop.permute.xlu0 %734 }
 0x197   : > { %953 = vmatmul.mubr.msk.bf16.vlgmr.msra.gmra.mrb[0].mxu1 %vm679_vm11, %v678_v1 }
 0x199   : > { %v816_v21 = vpop.permute.xlu0 %815 }
 0x19d   : > { %v743_v7 = vpop.permute.xlu1 %742  ;;  %v832_v27 = vpop.permute.xlu0 %831 }
 0x1a1   : > { %v821_v22 = vpop.permute.xlu1 %820 }
 0x1a5   : > { %v837_v38 = vpop.permute.xlu1 %836 }
 0x26a   : > { %v724_v2 = vpop.f32.mrb[0].mxu1 }
 0x26b   : > { %v737_v5 = vmul.f32 %v735_v30, %v724_v2  ;;  %v726_v6 = vpop.f32.mrb[1].mxu1 }
 0x26c   : > { %v738_v8 = vmul.f32 %v735_v30, %v726_v6  ;;  %v728_v9 = vpop.f32.mrb[2].mxu1 }
 0x26d   : > { %v745_v10 = vadd.f32 %v743_v7, %v737_v5  ;;  %v729_v11 = vpop.f32.mrb[3].mxu1 }
 0x26e   : > { %v746_v12 = vadd.f32 %v743_v7, %v738_v8 }
 0x26f   : > { %v747_v13 = vmax.f32 %v745_v10, 0.0 }
 0x270   : > { %v748_v14 = vmax.f32 %v746_v12, 0.0 }
 0x271   : > { %v751_v15 = vpack.c.bf16 %v747_v13, %v747_v13 }
 0x272   : > { %v752_v16 = vpack.c.bf16 %v748_v14, %v748_v14 }
 0x273   : > { %v763_v18 = vsel %vm683_vm10, %v751_v15, 0 }
 0x274   : > { %955 = vmatprep.subr.msk.bf16.mxu0 %vm683_vm10, %v752_v16 }
 0x275   : > { %769 = vmatpush1.bf16.msra.mxu0 %v763_v18 }
 0x278   : > { %956 = vmatmul.mubr.msk.bf16.vlgmr.msra.gmra.mrb[4].mxu0 %vm758_vm12, %v1017_v20 }
 0x34b   : > { %v802_v23 = vpop.f32.mrb[4].mxu0 }
 0x34c   : > { %v823_v24 = vmul.f32 %v816_v21, %v802_v23  ;;  %v804_v26 = vpop.f32.mrb[5].mxu0 }
 0x34d   : > { %v824_v28 = vmul.f32 %v816_v21, %v804_v26  ;;  %v806_v31 = vpop.f32.mrb[6].mxu0 }
 0x34e   : > { %v839_v32 = vadd.f32 %v832_v27, %v823_v24  ;;  %v825_v35 = vmul.f32 %v821_v22, %v806_v31  ;;  %v808_v37 = vpop.f32.mrb[7].mxu0 }
 0x34f   : > { %v840_v39 = vadd.f32 %v832_v27, %v824_v28  ;;  %v826_v40 = vmul.f32 %v821_v22, %v808_v37 }
 0x350   : > { %v847_v42 = vadd.f32 %v843_v25, %v839_v32  ;;  %v841_v43 = vadd.f32 %v837_v38, %v825_v35 }
 0x351   : > { %v848_v44 = vadd.f32 %v844_v29, %v840_v39  ;;  %v842_v45 = vadd.f32 %v837_v38, %v826_v40 }
 0x352   : > { %v851_v3 = vmax.f32 %v847_v42, 0.0  ;;  %v849_v46 = vadd.f32 %v845_v36, %v841_v43 }
 0x353   : > { %v852_v47 = vmax.f32 %v848_v44, 0.0  ;;  %v850_v48 = vadd.f32 %v846_v41, %v842_v45 }
 0x354   : > { %855 = vst [vmem:[%s379_s14] sm:$0xff] %v851_v3  ;;  %v853_v49 = vmax.f32 %v849_v46, 0.0 }
 0x355   : > { %856 = vst [vmem:[%s379_s14 + $0x8] sm:$0xff] %v852_v47  ;;  %v854_v4 = vmax.f32 %v850_v48, 0.0 }
 0x356   : > { %857 = vst [vmem:[%s379_s14 + $0x10] sm:$0xff] %v853_v49 }
 0x357   : > { %858 = vst [vmem:[%s379_s14 + $0x18] sm:$0xff] %v854_v4 }
 0x358   : > { %1031 = shalt.err (!%p1028_p3)
}
 0x359   : > { %s1032_s12 = scalar_lea.hbm %s1360_s29, 512  ;;  %s1036_s25 = scalar_lea.hbm %s1419_s11, 1024 }
 0x35a   : > { %p1033_p4 = scmp.ne.s32.totalorder %s1360_s29, %s1032_s12  ;;  %p1037_p9 = scmp.lt.u32.totalorder %s1360_s29, %s1419_s11 }
 0x35b   : > { %p1038_p10 = scmp.lt.u32.totalorder %s1036_s25, %s1032_s12  ;;  %p1040_p12 = scmp.lt.u32.totalorder %s1032_s12, %s1360_s29 }
 0x35c   : > { %p1034_p7 = pnand %p1033_p4, %p1191_p5 }
 0x35d   : > { %p1039_p11 = por %p1038_p10, %p1037_p9 }
 0x35e   : > { %p1035_p8 = pneg %p1034_p7 }
 0x35f   : > { %p1041_p13 = por %p1040_p12, %p1039_p11 }
 0x361   : > { %p1042_p0 = pnand %p1041_p13, %p1035_p8 }
 0x363   : > { %1045 = shalt.err (!%p1042_p0)
}
 0x364   : > { %s1092_s22 = smov 256   ;;  %s1423_s13 = smov 16  }
 0x365   : > { %964 = dma.vmem_to_hbm [thread:$0]  (%p1191_p5), %s1362_s15, 512, %s1360_s29, %s1366_s21, %s1092_s22, %s1092_s22, %s1423_s13  }
 0x366 PF: > { %p970_p1 = scmp.ge.s32.totalorder %s1080_s20, 2  ;;  %s888_s14 = sand.u32 1, %s1068_s17  }
 0x367   : > { %s889_s12 = scalar_lea.sflag [#allocation3], %s888_s14 }
 0x368   : > { %p967_p2 = pnand %p970_p1, %p1195_p6 }
 0x36a   : > { %1063 = dma.done.wait (!%p967_p2), %s889_s12, 512  }
 0x36b   : > { %1065 = vsyncadd (!%p967_p2), %s889_s12, 4294966784  ;;  %p21_p3 = scmp.ge.s32.totalorder %s1178_s23, 4   ;;  %s1424_s17 = smov %s1072_s18 }
 0x36c   : > { %s1425_s18 = smov %s1076_s19  ;;  %s1426_s19 = smov %s1189_s26 }
 0x36d   : > { %s1427_s20 = smov %s1178_s23  ;;  %23 = sbr.rel (!%p21_p3) target bundleno = 3 (0x3), region = 106 }
 0x374   :  { %894 = vsyncpa [#allocation3], 1 }
 0x375   :  { %896 = vsyncpa [#allocation3 + $0x1], 1 }

</bundles_post_ra>
